<compile_context>
chip_gen: v7x
topology: tpu7x:2x2x1
jax: 0.10.0
libtpu: 0.0.40
codegen_flags: <defaults>
</compile_context>

<pallas_src>
import functools
import math

import jax
import jax.numpy as jnp
from jax.experimental import pallas as pl
from jax.experimental.pallas import tpu as pltpu

LANE = 128  # lane width: hidden (VMEM-resident) dims are padded to this


def _round_up(x, m):
    return ((x + m - 1) // m) * m


def _cdiv(a, b):
    return -(-a // b)


def fcnn_kernel(x_ref, w1_ref, b1_ref, w2_ref, b2_ref, w3_ref, b3_ref, o_ref):
    """One batch tile of Linear -> tanh -> Linear -> tanh -> Linear, all in VMEM.

    MXU matmuls accumulate in f32 (preferred_element_type); bias adds stay f32;
    activations are cast to the compute dtype *before* tanh so the bf16 path
    uses the bf16 EUP on v6e/v7x (for f32 the cast is a no-op).
    """
    cdt = w2_ref.dtype
    x = x_ref[...]
    h1 = jnp.tanh(
        (jnp.dot(x, w1_ref[...], preferred_element_type=jnp.float32)
         + b1_ref[...]).astype(cdt))
    h2 = jnp.tanh(
        (jnp.dot(h1, w2_ref[...], preferred_element_type=jnp.float32)
         + b2_ref[...]).astype(cdt))
    out = jnp.dot(h2, w3_ref[...], preferred_element_type=jnp.float32) + b3_ref[...]
    o_ref[...] = out.astype(o_ref.dtype)


def _vmem_capacity_bytes():
    try:
        return int(pltpu.get_tpu_info().vmem_capacity_bytes)
    except Exception:
        return 64 << 20  # conservative (v7x-sized) fallback


@functools.partial(jax.jit, static_argnames=("compute_dtype", "max_batch_tile"))
def fcnn_forward(x, w1, b1, w2, b2, w3, b3, *, compute_dtype=None, max_batch_tile=1024):
    """y = tanh(tanh(x @ W1 + b1) @ W2 + b2) @ W3 + b3 (weights stored (in, out))."""
    out_dtype = x.dtype
    B, in_dim = x.shape
    hidden_dim = w1.shape[1]
    out_dim = w3.shape[1]

    # ---- compute dtype (bf16 only where the VPU/EUP supports it) --------------
    cdt = jnp.dtype(compute_dtype) if compute_dtype is not None else jnp.dtype(x.dtype)
    if cdt == jnp.dtype(jnp.bfloat16) and jnp.dtype(x.dtype) == jnp.dtype(jnp.float32):
        kind = jax.devices()[0].device_kind.lower()
        if any(v in kind for v in ("v2", "v3", "v4", "v5")):
            cdt = jnp.dtype(jnp.float32)  # v5e & older: keep f32

    csize = cdt.itemsize
    osize = jnp.dtype(out_dtype).itemsize
    sublane_mult = 16 if cdt == jnp.dtype(jnp.bfloat16) else 8  # bf16 packs 2 rows/sublane

    # Hidden dim padded to a lane multiple: these arrays are VMEM-resident
    # (constant index maps, fetched from HBM once), so the pad costs ~nothing,
    # keeps every MXU pass lane-dense, and is exact (zero rows/cols, tanh(0)=0).
    # x's feature dim and the output dim are NOT padded (streamed every tile).
    hid_p = _round_up(hidden_dim, LANE)

    # ---- generation-aware VMEM budget ------------------------------------------
    vmem_cap = _vmem_capacity_bytes()              # ~128 MiB v5e/v6e, ~64 MiB v7x
    budget = max(vmem_cap - (16 << 20), 32 << 20)  # leave headroom

    weight_bytes = (in_dim * hid_p + hid_p * hid_p + hid_p * out_dim) * csize \
        + (2 * hid_p + out_dim) * 4
    resident_bytes = 2 * weight_bytes  # conservative: compiler may double-buffer
    # TODO(synk): add a hidden-dim (K) tiled grid axis + f32 VMEM accumulator
    # (and/or single-buffered weight blocks) as a fallback when resident weights
    # exceed the budget (very large hidden_dim, especially on v7x's 64 MiB VMEM).

    # ---- batch tile derived from leftover VMEM ----------------------------------
    per_row_bytes = 2 * (in_dim * csize + out_dim * osize) \
        + in_dim * csize + 2 * hid_p * 4 + out_dim * 4
    leftover = max(budget - resident_bytes - (4 << 20), 0)
    tile_cap = max(leftover // max(per_row_bytes, 1), sublane_mult)
    target_tile = max(min(max_batch_tile, (tile_cap // sublane_mult) * sublane_mult),
                      sublane_mult)

    n_steps = _cdiv(B, target_tile)
    if n_steps == 1 and B >= 512:
        n_steps = 2  # give both v7x TensorCores >=256-row tiles
    batch_tile = _round_up(_cdiv(B, n_steps), sublane_mult)
    B_pad = n_steps * batch_tile
    grid = (n_steps,)

    # ---- pad / cast inputs (only batch rows and the hidden dim get padded) ------
    def pad2(a, rows, cols, dt):
        if a.dtype != dt:
            a = a.astype(dt)
        pr, pc = rows - a.shape[0], cols - a.shape[1]
        if pr or pc:
            a = jnp.pad(a, ((0, pr), (0, pc)))
        return a

    xp = pad2(x, B_pad, in_dim, cdt)
    w1p = pad2(w1, in_dim, hid_p, cdt)
    w2p = pad2(w2, hid_p, hid_p, cdt)
    w3p = pad2(w3, hid_p, out_dim, cdt)
    b1p = pad2(b1, 1, hid_p, jnp.float32)
    b2p = pad2(b2, 1, hid_p, jnp.float32)
    b3p = pad2(b3, 1, out_dim, jnp.float32)

    # Weights/biases: full-array blocks, constant index map -> VMEM-resident.
    full = lambda shape: pl.BlockSpec(shape, lambda i: (0,) * len(shape))
    in_specs = [
        pl.BlockSpec((batch_tile, in_dim), lambda i: (i, 0)),  # streaming x tile
        full((in_dim, hid_p)), full((1, hid_p)),               # w1, b1
        full((hid_p, hid_p)), full((1, hid_p)),                # w2, b2
        full((hid_p, out_dim)), full((1, out_dim)),            # w3, b3
    ]
    out_specs = pl.BlockSpec((batch_tile, out_dim), lambda i: (i, 0))

    # ---- VMEM limit (resident weights + double-buffered I/O tiles + activations)
    io_bytes = 2 * batch_tile * (in_dim * csize + out_dim * osize)
    act_bytes = batch_tile * (in_dim * csize + 2 * hid_p * 4 + out_dim * 4)
    needed = resident_bytes + io_bytes + act_bytes + (2 << 20)
    vmem_limit_bytes = int(max(16 << 20, min(needed, budget)))

    # ---- scheduling hint (actual streamed bytes, single-copy weights) -----------
    cost = pl.CostEstimate(
        flops=2 * B_pad * (in_dim * hid_p + hid_p * hid_p + hid_p * out_dim),
        transcendentals=2 * B_pad * hid_p,
        bytes_accessed=B_pad * in_dim * csize + B_pad * out_dim * osize + weight_bytes,
    )

    out_padded = pl.pallas_call(
        fcnn_kernel,
        out_shape=jax.ShapeDtypeStruct((B_pad, out_dim), out_dtype),
        grid_spec=pltpu.PrefetchScalarGridSpec(
            num_scalar_prefetch=0,
            grid=grid,
            in_specs=in_specs,
            out_specs=out_specs,
        ),
        compiler_params=pltpu.CompilerParams(
            dimension_semantics=("parallel",),
            vmem_limit_bytes=vmem_limit_bytes,
        ),
        cost_estimate=cost,
    )(xp, w1p, b1p, w2p, b2p, w3p, b3p)

    return out_padded[:B, :]


def init_linear(key, fan_in, fan_out, dtype=jnp.float32):
    # Mimics PyTorch nn.Linear defaults: U(-1/sqrt(fan_in), 1/sqrt(fan_in)).
    kw, kb = jax.random.split(key)
    bound = 1.0 / math.sqrt(fan_in)
    # Stored as (in, out) — transpose of PyTorch's (out, in) layout.
    w = jax.random.uniform(kw, (fan_in, fan_out), dtype, -bound, bound)
    b = jax.random.uniform(kb, (1, fan_out), dtype, -bound, bound)
    return w, b


def fcnn_reference(x, w1, b1, w2, b2, w3, b3):
    h1 = jnp.tanh(x @ w1 + b1)
    h2 = jnp.tanh(h1 @ w2 + b2)
    return h2 @ w3 + b3


if __name__ == "__main__":
    key = jax.random.PRNGKey(0)

    # --- small case (module-like shapes), f32, single grid step ---------------
    in_dim, hidden_dim, out_dim, batch = 8, 32, 4, 16
    kx, k1, k2, k3 = jax.random.split(key, 4)
    x = jax.random.normal(kx, (batch, in_dim), jnp.float32)
    w1, b1 = init_linear(k1, in_dim, hidden_dim)
    w2, b2 = init_linear(k2, hidden_dim, hidden_dim)
    w3, b3 = init_linear(k3, hidden_dim, out_dim)

    out = jax.block_until_ready(fcnn_forward(x, w1, b1, w2, b2, w3, b3))
    ref = fcnn_reference(x, w1, b1, w2, b2, w3, b3)
    assert out.shape == (batch, out_dim)
    assert jnp.allclose(out, ref, atol=1e-5, rtol=1e-5), "small f32 mismatch"

    # --- ragged batch (exercises sublane-rounded tail padding) -----------------
    xr = jax.random.normal(jax.random.PRNGKey(7), (300, in_dim), jnp.float32)
    outr = jax.block_until_ready(fcnn_forward(xr, w1, b1, w2, b2, w3, b3))
    refr = fcnn_reference(xr, w1, b1, w2, b2, w3, b3)
    assert outr.shape == (300, out_dim)
    assert jnp.allclose(outr, refr, atol=1e-5, rtol=1e-5), "ragged f32 mismatch"

    # --- larger case: split into 2 parallel grid steps (v7x dual-TC) ----------
    in_dim2, hidden_dim2, out_dim2, batch2 = 8, 256, 4, 512
    kx2, k4, k5, k6 = jax.random.split(jax.random.PRNGKey(1), 4)
    x2 = jax.random.normal(kx2, (batch2, in_dim2), jnp.float32)
    w1b, b1b = init_linear(k4, in_dim2, hidden_dim2)
    w2b, b2b = init_linear(k5, hidden_dim2, hidden_dim2)
    w3b, b3b = init_linear(k6, hidden_dim2, out_dim2)

    out2 = jax.block_until_ready(fcnn_forward(x2, w1b, b1b, w2b, b2b, w3b, b3b))
    ref2 = fcnn_reference(x2, w1b, b1b, w2b, b2b, w3b, b3b)
    assert out2.shape == (batch2, out_dim2)
    assert jnp.allclose(out2, ref2, atol=1e-4, rtol=1e-4), "large f32 mismatch"

    # --- bf16 compute path (v6e/v7x MXU + bf16 tanh); f32 accumulation --------
    out3 = jax.block_until_ready(
        fcnn_forward(x2, w1b, b1b, w2b, b2b, w3b, b3b, compute_dtype=jnp.bfloat16)
    )
    assert out3.shape == (batch2, out_dim2)
    assert jnp.allclose(out3, ref2, atol=1e-1, rtol=1e-1), "bf16 mismatch"

    print("KERNEL_OK")
</pallas_src>

<mosaic_0001>
module attributes {stable_mosaic.version = 11 : i64} {
  func.func @fcnn_kernel(%arg0: i32, %arg1: memref<16x8xf32, #tpu.memory_space<vmem>>, %arg2: memref<8x128xf32, #tpu.memory_space<vmem>>, %arg3: memref<1x128xf32, #tpu.memory_space<vmem>>, %arg4: memref<128x128xf32, #tpu.memory_space<vmem>>, %arg5: memref<1x128xf32, #tpu.memory_space<vmem>>, %arg6: memref<128x4xf32, #tpu.memory_space<vmem>>, %arg7: memref<1x4xf32, #tpu.memory_space<vmem>>, %arg8: memref<16x4xf32, #tpu.memory_space<vmem>>) attributes {dimension_semantics = [#tpu.dimension_semantics<parallel>], iteration_bounds = array<i64: 1>, scalar_prefetch = 0 : i64, scratch_operands = 0 : i64, tpu.core_type = #tpu.core_type<tc>, window_params = [{transform_indices = @transform_0, window_bounds = array<i64: 16, 8>}, {pipeline_mode = #tpu.pipeline_mode<synchronous>, transform_indices = @transform_1, window_bounds = array<i64: 8, 128>}, {pipeline_mode = #tpu.pipeline_mode<synchronous>, transform_indices = @transform_2, window_bounds = array<i64: 1, 128>}, {pipeline_mode = #tpu.pipeline_mode<synchronous>, transform_indices = @transform_3, window_bounds = array<i64: 128, 128>}, {pipeline_mode = #tpu.pipeline_mode<synchronous>, transform_indices = @transform_4, window_bounds = array<i64: 1, 128>}, {pipeline_mode = #tpu.pipeline_mode<synchronous>, transform_indices = @transform_5, window_bounds = array<i64: 128, 4>}, {pipeline_mode = #tpu.pipeline_mode<synchronous>, transform_indices = @transform_6, window_bounds = array<i64: 1, 4>}, {transform_indices = @transform_7, window_bounds = array<i64: 16, 4>}]} {
    %c0 = arith.constant 0 : index
    %c0_0 = arith.constant 0 : index
    %0 = vector.load %arg1[%c0, %c0_0] : memref<16x8xf32, #tpu.memory_space<vmem>>, vector<16x8xf32>
    %c0_1 = arith.constant 0 : index
    %c0_2 = arith.constant 0 : index
    %1 = vector.load %arg2[%c0_1, %c0_2] : memref<8x128xf32, #tpu.memory_space<vmem>>, vector<8x128xf32>
    %cst = arith.constant dense<0.000000e+00> : vector<16x128xf32>
    %2 = tpu.matmul %0, %1, %cst {dimension_numbers = #tpu.dot_dimension_numbers<[1], [0], [0], [1], [0, 0, 1, 1], [], []>} : vector<16x8xf32>, vector<8x128xf32>, vector<16x128xf32> -> vector<16x128xf32>
    %c0_3 = arith.constant 0 : index
    %c0_4 = arith.constant 0 : index
    %3 = vector.load %arg3[%c0_3, %c0_4] : memref<1x128xf32, #tpu.memory_space<vmem>>, vector<1x128xf32>
    %4 = vector.broadcast %3 : vector<1x128xf32> to vector<16x128xf32>
    %5 = arith.addf %2, %4 : vector<16x128xf32>
    %6 = math.tanh %5 : vector<16x128xf32>
    %c0_5 = arith.constant 0 : index
    %c0_6 = arith.constant 0 : index
    %7 = vector.load %arg4[%c0_5, %c0_6] : memref<128x128xf32, #tpu.memory_space<vmem>>, vector<128x128xf32>
    %cst_7 = arith.constant dense<0.000000e+00> : vector<16x128xf32>
    %8 = tpu.matmul %6, %7, %cst_7 {dimension_numbers = #tpu.dot_dimension_numbers<[1], [0], [0], [1], [0, 0, 1, 1], [], []>} : vector<16x128xf32>, vector<128x128xf32>, vector<16x128xf32> -> vector<16x128xf32>
    %c0_8 = arith.constant 0 : index
    %c0_9 = arith.constant 0 : index
    %9 = vector.load %arg5[%c0_8, %c0_9] : memref<1x128xf32, #tpu.memory_space<vmem>>, vector<1x128xf32>
    %10 = vector.broadcast %9 : vector<1x128xf32> to vector<16x128xf32>
    %11 = arith.addf %8, %10 : vector<16x128xf32>
    %12 = math.tanh %11 : vector<16x128xf32>
    %c0_10 = arith.constant 0 : index
    %c0_11 = arith.constant 0 : index
    %13 = vector.load %arg6[%c0_10, %c0_11] : memref<128x4xf32, #tpu.memory_space<vmem>>, vector<128x4xf32>
    %cst_12 = arith.constant dense<0.000000e+00> : vector<16x4xf32>
    %14 = tpu.matmul %12, %13, %cst_12 {dimension_numbers = #tpu.dot_dimension_numbers<[1], [0], [0], [1], [0, 0, 1, 1], [], []>} : vector<16x128xf32>, vector<128x4xf32>, vector<16x4xf32> -> vector<16x4xf32>
    %c0_13 = arith.constant 0 : index
    %c0_14 = arith.constant 0 : index
    %15 = vector.load %arg7[%c0_13, %c0_14] : memref<1x4xf32, #tpu.memory_space<vmem>>, vector<1x4xf32>
    %16 = vector.broadcast %15 : vector<1x4xf32> to vector<16x4xf32>
    %17 = arith.addf %14, %16 : vector<16x4xf32>
    %c0_15 = arith.constant 0 : index
    %c0_16 = arith.constant 0 : index
    %18 = vector.load %arg8[%c0_15, %c0_16] : memref<16x4xf32, #tpu.memory_space<vmem>>, vector<16x4xf32>
    tpu.vector_store %arg8[%c0_15, %c0_16], %17 {strides = array<i32>} : memref<16x4xf32, #tpu.memory_space<vmem>>, vector<16x4xf32>,
    return
  }
  func.func @transform_0(%arg0: i32) -> (i32, i32) {
    %c0_i32 = arith.constant 0 : i32
    %c0_i32_0 = arith.constant 0 : i32
    return %arg0, %c0_i32 : i32, i32
  }
  func.func @transform_1(%arg0: i32) -> (i32, i32) {
    %c0_i32 = arith.constant 0 : i32
    %c0_i32_0 = arith.constant 0 : i32
    %c0_i32_1 = arith.constant 0 : i32
    return %c0_i32, %c0_i32_0 : i32, i32
  }
  func.func @transform_2(%arg0: i32) -> (i32, i32) {
    %c0_i32 = arith.constant 0 : i32
    %c0_i32_0 = arith.constant 0 : i32
    %c0_i32_1 = arith.constant 0 : i32
    return %c0_i32, %c0_i32_0 : i32, i32
  }
  func.func @transform_3(%arg0: i32) -> (i32, i32) {
    %c0_i32 = arith.constant 0 : i32
    %c0_i32_0 = arith.constant 0 : i32
    %c0_i32_1 = arith.constant 0 : i32
    return %c0_i32, %c0_i32_0 : i32, i32
  }
  func.func @transform_4(%arg0: i32) -> (i32, i32) {
    %c0_i32 = arith.constant 0 : i32
    %c0_i32_0 = arith.constant 0 : i32
    %c0_i32_1 = arith.constant 0 : i32
    return %c0_i32, %c0_i32_0 : i32, i32
  }
  func.func @transform_5(%arg0: i32) -> (i32, i32) {
    %c0_i32 = arith.constant 0 : i32
    %c0_i32_0 = arith.constant 0 : i32
    %c0_i32_1 = arith.constant 0 : i32
    return %c0_i32, %c0_i32_0 : i32, i32
  }
  func.func @transform_6(%arg0: i32) -> (i32, i32) {
    %c0_i32 = arith.constant 0 : i32
    %c0_i32_0 = arith.constant 0 : i32
    %c0_i32_1 = arith.constant 0 : i32
    return %c0_i32, %c0_i32_0 : i32, i32
  }
  func.func @transform_7(%arg0: i32) -> (i32, i32) {
    %c0_i32 = arith.constant 0 : i32
    %c0_i32_0 = arith.constant 0 : i32
    return %arg0, %c0_i32 : i32, i32
  }
}

</mosaic_0001>

<bundles_post_ra>
// kernel: fcnn_forward.1
= control target key start
LH: loop header
LB: loop body
LE: loop exit
PB: predicated region body
PF: predicated region fallthrough
CT: control target
= control target key end

     0   :  { %vm36_vm0 = vcmask 64512   ;;  %vm318_vm1 = vcmask 31744   ;;  %s676_s1 = inlined_call_operand.vmem [shape: f32[8,128], index: 1, kind: input, shape index: {}]   ;;  %s677_s0 = inlined_call_operand.vmem [shape: f32[16,8], index: 0, kind: input, shape index: {}]   ;;  %s678_s3 = inlined_call_operand.vmem [shape: f32[128,128], index: 3, kind: input, shape index: {}]   ;;  %s679_s5 = inlined_call_operand.vmem [shape: f32[128,4], index: 5, kind: input, shape index: {}]   ;;  %s680_s2 = inlined_call_operand.vmem [shape: f32[1,128], index: 2, kind: input, shape index: {}]   ;;  %s681_s4 = inlined_call_operand.vmem [shape: f32[1,128], index: 4, kind: input, shape index: {}]   ;;  %s682_s6 = inlined_call_operand.vmem [shape: f32[1,4], index: 6, kind: input, shape index: {}]   ;;  %s683_s7 = inlined_call_operand.vmem [shape: f32[16,4], index: 7, kind: output, shape index: {}]  }
   0x1   :  { %v28_v0 = vld [vmem:[%s676_s1] sm:$0xff]  ;;  %v27_v2 = vld [vmem:[%s677_s0 + $0x8] sm:$0xff]  ;;  %v122_v5 = vld [vmem:[%s678_s3 + $0x10] sm:$0xff] }
   0x2   :  { %v26_v1 = vld [vmem:[%s677_s0] sm:$0xff]  ;;  %369 = vmatprep.subr.mxu0 %v28_v0  ;;  %v121_v4 = vld [vmem:[%s678_s3 + $0x8] sm:$0xff]  ;;  %v123_v7 = vld [vmem:[%s678_s3 + $0x18] sm:$0xff] }
   0x3   :  { %371 = vmatprep.mubr.msk.f32.mxu0 %vm36_vm0, %v26_v1  ;;  %v120_v3 = vld [vmem:[%s678_s3] sm:$0xff]  ;;  %370 = vmatpush3.msra.mxu0 %v28_v0  ;;  %v448_v8 = vpack.c.bf16 %v123_v7, %v122_v5  ;;  %v125_v10 = vld [vmem:[%s678_s3 + $0x28] sm:$0xff]  ;;  %v126_v12 = vld [vmem:[%s678_s3 + $0x30] sm:$0xff] }
   0x4   :  { %v444_v6 = vpack.c.bf16 %v121_v4, %v120_v3  ;;  %372 = vmatmul.mubr.msk.f32.vlgmr.msra.gmra.mrb[0].mxu0 %vm36_vm0, %v27_v2  ;;  %v124_v9 = vld [vmem:[%s678_s3 + $0x20] sm:$0xff]  ;;  %v127_v13 = vld [vmem:[%s678_s3 + $0x38] sm:$0xff]  ;;  %v129_v16 = vld [vmem:[%s678_s3 + $0x48] sm:$0xff] }
   0x5   :  { %v452_v11 = vpack.c.bf16 %v125_v10, %v124_v9  ;;  %v456_v14 = vpack.c.bf16 %v127_v13, %v126_v12  ;;  %v128_v15 = vld [vmem:[%s678_s3 + $0x40] sm:$0xff]  ;;  %v130_v18 = vld [vmem:[%s678_s3 + $0x50] sm:$0xff]  ;;  %v131_v19 = vld [vmem:[%s678_s3 + $0x58] sm:$0xff] }
   0x6   :  { %445 = vmatprep.subr.bf16.mxu1 %v444_v6  ;;  %v460_v17 = vpack.c.bf16 %v129_v16, %v128_v15  ;;  %v464_v20 = vpack.c.bf16 %v131_v19, %v130_v18  ;;  %v132_v21 = vld [vmem:[%s678_s3 + $0x60] sm:$0xff]  ;;  %v133_v22 = vld [vmem:[%s678_s3 + $0x68] sm:$0xff]  ;;  %v134_v23 = vld [vmem:[%s678_s3 + $0x70] sm:$0xff] }
   0x7   :  { %447 = vmatpush3.bf16.msra.mxu1 %v444_v6  ;;  %v468_v24 = vpack.c.bf16 %v133_v22, %v132_v21  ;;  %v135_v25 = vld [vmem:[%s678_s3 + $0x78] sm:$0xff]  ;;  %v220_v27 = vld [vmem:[%s679_s5] sm:$0xff]  ;;  %v221_v28 = vld [vmem:[%s679_s5 + $0x8] sm:$0xff] }
   0x8   :  { %449 = vmatprep.subr.bf16.mxu1 %v448_v8  ;;  %v472_v26 = vpack.c.bf16 %v135_v25, %v134_v23  ;;  %v222_v29 = vld [vmem:[%s679_s5 + $0x10] sm:$0xff]  ;;  %v476_v30 = vpack.c.bf16 %v221_v28, %v220_v27  ;;  %v223_v31 = vld [vmem:[%s679_s5 + $0x18] sm:$0xff]  ;;  %v224_v33 = vld [vmem:[%s679_s5 + $0x20] sm:$0xff] }
   0x9   :  { %v480_v32 = vpack.c.bf16 %v223_v31, %v222_v29  ;;  %v225_v34 = vld [vmem:[%s679_s5 + $0x28] sm:$0xff]  ;;  %v226_v36 = vld [vmem:[%s679_s5 + $0x30] sm:$0xff]  ;;  %v227_v37 = vld [vmem:[%s679_s5 + $0x38] sm:$0xff] }
   0xa   :  { %477 = vmatprep.subr.bf16.mxu0 %v476_v30  ;;  %v484_v35 = vpack.c.bf16 %v225_v34, %v224_v33  ;;  %v488_v38 = vpack.c.bf16 %v227_v37, %v226_v36  ;;  %v325_v39 = vld [vmem:[%s680_s2] ss:$0 sm:$0xff]  ;;  %v229_v47 = vld [vmem:[%s679_s5 + $0x48] sm:$0xff]  ;;  %v230_v49 = vld [vmem:[%s679_s5 + $0x50] sm:$0xff] }
   0xb   :  { %451 = vmatpush3.bf16.msra.mxu1 %v448_v8  ;;  %479 = vmatpush3.bf16.msra.mxu0 %v476_v30  ;;  %v228_v46 = vld [vmem:[%s679_s5 + $0x40] sm:$0xff]  ;;  %v231_v50 = vld [vmem:[%s679_s5 + $0x58] sm:$0xff]  ;;  %v233_v53 = vld [vmem:[%s679_s5 + $0x68] sm:$0xff] }
   0xc   :  { %453 = vmatprep.subr.bf16.mxu1 %v452_v11  ;;  %481 = vmatprep.subr.bf16.mxu0 %v480_v32  ;;  %v492_v48 = vpack.c.bf16 %v229_v47, %v228_v46  ;;  %v496_v51 = vpack.c.bf16 %v231_v50, %v230_v49  ;;  %v232_v52 = vld [vmem:[%s679_s5 + $0x60] sm:$0xff]  ;;  %v234_v54 = vld [vmem:[%s679_s5 + $0x70] sm:$0xff]  ;;  %v235_v56 = vld [vmem:[%s679_s5 + $0x78] sm:$0xff] }
   0xd   :  { %v500_v55 = vpack.c.bf16 %v233_v53, %v232_v52  ;;  %v504_v57 = vpack.c.bf16 %v235_v56, %v234_v54  ;;  %v328_v58 = vld [vmem:[%s681_s4] ss:$0 sm:$0xff] }
   0xe   :  { %v329_v1 = vld [vmem:[%s682_s6] ss:$0 sm:$0xff] }
   0xf   :  { %455 = vmatpush3.bf16.msra.mxu1 %v452_v11  ;;  %483 = vmatpush3.bf16.msra.mxu0 %v480_v32 }
  0x10   :  { %457 = vmatprep.subr.bf16.mxu1 %v456_v14  ;;  %485 = vmatprep.subr.bf16.mxu0 %v484_v35 }
  0x13   :  { %459 = vmatpush3.bf16.msra.mxu1 %v456_v14  ;;  %487 = vmatpush3.bf16.msra.mxu0 %v484_v35 }
  0x14   :  { %461 = vmatprep.subr.bf16.mxu1 %v460_v17  ;;  %489 = vmatprep.subr.bf16.mxu0 %v488_v38 }
  0x17   :  { %463 = vmatpush3.bf16.msra.mxu1 %v460_v17  ;;  %491 = vmatpush3.bf16.msra.mxu0 %v488_v38 }
  0x18   :  { %465 = vmatprep.subr.bf16.mxu1 %v464_v20  ;;  %493 = vmatprep.subr.bf16.mxu0 %v492_v48 }
  0x1b   :  { %467 = vmatpush3.bf16.msra.mxu1 %v464_v20  ;;  %495 = vmatpush3.bf16.msra.mxu0 %v492_v48 }
  0x1c   :  { %469 = vmatprep.subr.bf16.mxu1 %v468_v24  ;;  %497 = vmatprep.subr.bf16.mxu0 %v496_v51 }
  0x1f   :  { %471 = vmatpush3.bf16.msra.mxu1 %v468_v24  ;;  %499 = vmatpush3.bf16.msra.mxu0 %v496_v51 }
  0x20   :  { %473 = vmatprep.subr.bf16.mxu1 %v472_v26  ;;  %501 = vmatprep.subr.bf16.mxu0 %v500_v55 }
  0x23   :  { %475 = vmatpush3.bf16.msra.mxu1 %v472_v26  ;;  %503 = vmatpush3.bf16.msra.mxu0 %v500_v55 }
  0x24   :  { %505 = vmatprep.subr.bf16.mxu0 %v504_v57 }
  0x27   :  { %507 = vmatpush3.bf16.msra.mxu0 %v504_v57 }
  0xd7   :  { %v373_v40 = vpop.f32.mrb[0].mxu0 }
  0xd8   :  { %v115_v41 = vadd.f32 %v373_v40, %v325_v39  ;;  %v109_v42 = vpop.f32.mrb[1].mxu0 }
  0xd9   :  { %v110_v43 = vadd.f32 %v325_v39, %v109_v42 }
  0xdb   :  { %508 = vtanh.f32 %v110_v43 }
  0xdc   :  { %510 = vtanh.f32 %v115_v41 }
  0xe5   :  { %v509_v44 = vpop.eup %508 }
  0xe6   :  { %v511_v45 = vpop.eup %510  ;;  %406 = vmatprep.mubr.f32.mxu1 %v509_v44 }
  0xe7   :  { %407 = vmatmul.mubr.f32.vlgmr.msra.gmra.mrb[0].mxu1 %v511_v45 }
 0x1ba   :  { %v408_v59 = vpop.f32.mrb[0].mxu1 }
 0x1bb   :  { %v215_v60 = vadd.f32 %v408_v59, %v328_v58  ;;  %v209_v61 = vpop.f32.mrb[1].mxu1 }
 0x1bc   :  { %v210_v62 = vadd.f32 %v328_v58, %v209_v61 }
 0x1be   :  { %512 = vtanh.f32 %v210_v62 }
 0x1bf   :  { %514 = vtanh.f32 %v215_v60 }
 0x1c8   :  { %v513_v63 = vpop.eup %512 }
 0x1c9   :  { %v515_v0 = vpop.eup %514  ;;  %441 = vmatprep.mubr.f32.mxu0 %v513_v63 }
 0x1ca   :  { %442 = vmatmul.mubr.f32.vlgmr.msra.gmra.mrb[2].mxu0 %v515_v0 }
 0x29d   :  { %v443_v2 = vpop.f32.mrb[2].mxu0 }
 0x29e   :  { %v315_v3 = vadd.f32 %v443_v2, %v329_v1  ;;  %v309_v4 = vpop.f32.mrb[3].mxu0 }
 0x29f   :  { %v310_v5 = vadd.f32 %v329_v1, %v309_v4 }
 0x2a0   :  { %320 = vst.msk [vmem:[%s683_s7 + $0x8] sm:$0xff] %vm318_vm1, %v315_v3 }
 0x2a1   :  { %319 = vst.msk [vmem:[%s683_s7] sm:$0xff] %vm318_vm1, %v310_v5 }

</bundles_post_ra>
